<compile_context>
chip_gen: v7x
topology: tpu7x:2x2x1
jax: 0.10.0
libtpu: 0.0.40
codegen_flags: <defaults>
</compile_context>

<pallas_src>
import functools

import jax
import jax.numpy as jnp
from jax.experimental import pallas as pl
from jax.experimental.pallas import tpu as pltpu


def _stem_kernel(p_ref, w_ref, b_ref, g_ref, beta_ref, o_ref):
    # p_ref: (NB, K, TS)   w_ref: (C2, K)   b/g/beta: (C2, 1)   o_ref: (NB, C2, TS)
    w = w_ref[...]
    bias = b_ref[...]
    gamma = g_ref[...]
    beta = beta_ref[...]
    inv_c = 1.0 / w.shape[0]

    # NB is a small static int -> unrolled loop of independent (C2,K)@(K,TS) matmuls.
    for i in range(p_ref.shape[0]):
        # MXU matmul, f32 accumulation; channels on sublanes, spatial on lanes.
        y = jnp.dot(w, p_ref[i], preferred_element_type=jnp.float32)   # (C2, TS)
        y = y + bias                                                   # conv bias before LN

        # channels_first LayerNorm: mean / biased var over channels (sublane axis),
        # two-pass variance (matches reference, no cancellation), rsqrt on the EUP.
        mean = jnp.sum(y, axis=0, keepdims=True) * inv_c               # (1, TS)
        yc = y - mean
        var = jnp.sum(yc * yc, axis=0, keepdims=True) * inv_c
        y = yc * jax.lax.rsqrt(var + 1e-6)
        o_ref[i] = (gamma * y + beta).astype(o_ref.dtype)


def _choose_tiles(B, S, nb_target, ts_target):
    """Pick (NB, TS): batch block (divisor of B) and spatial tile (multiple of 128 or S)."""
    TS = S if ts_target >= S else max(128, (ts_target // 128) * 128)
    NB = max(1, min(nb_target, B))
    while B % NB:
        NB -= 1

    def n_blocks(nb, ts):
        return (B // nb) * pl.cdiv(S, ts)

    # Prefer >= 2 independent grid blocks (megacore sharding on v7x): shrink the batch
    # block first (cheap), then split the spatial tile if it is the full extent.
    while n_blocks(NB, TS) < 2 and NB > 1:
        NB -= 1
        while B % NB:
            NB -= 1
    if n_blocks(NB, TS) < 2 and TS == S and S >= 256:
        TS = max(128, ((S + 255) // 256) * 128)   # ~half of S, multiple of 128
    return NB, TS


def convnext_stem(x, conv_w, conv_b, ln_w, ln_b, *, k, s,
                  batch_block=4, tile_s=4096,
                  compute_dtype=jnp.bfloat16, out_dtype=None):
    """ConvNeXt stem: Conv2d(c1, c2, k, s, padding=0) + channels_first LayerNorm.

    x: (B, C1, H, W) NCHW.  conv_w: (C2, C1, k, k), conv_b/ln_w/ln_b: (C2,).
    Returns (B, C2, H//s, W//s) in out_dtype (defaults to x.dtype).
    """
    assert k == s, "ConvNeXt stem uses non-overlapping patches (k == s)"
    # TODO(synk): general strided/overlapping conv (k != s), groups > 1 or dilation > 1
    # are not handled; the ConvNeXt stem uses k == s, groups=1, dilation=1.
    B, C1, H, W = x.shape
    C2 = conv_w.shape[0]
    Ho, Wo = H // k, W // k
    S = Ho * Wo
    K = C1 * k * k
    out_dtype = x.dtype if out_dtype is None else out_dtype

    # im2col directly in the (B, K, S) layout the kernel wants; K ordered (c1, kh, kw)
    # so the weight side is the natural conv_w.reshape(C2, K) (no weight permutation).
    patches = x[:, :, : Ho * k, : Wo * k].reshape(B, C1, Ho, k, Wo, k)
    patches = patches.transpose(0, 1, 3, 5, 2, 4).reshape(B, K, S).astype(compute_dtype)

    w_mat = conv_w.reshape(C2, K).astype(compute_dtype)     # (C2, K) — K on lanes of tiny op
    b_col = conv_b.reshape(C2, 1).astype(jnp.float32)
    g_col = ln_w.reshape(C2, 1).astype(jnp.float32)
    beta_col = ln_b.reshape(C2, 1).astype(jnp.float32)

    NB, TS = _choose_tiles(B, S, batch_block, tile_s)
    grid = (B // NB, pl.cdiv(S, TS))

    # Scoped-VMEM limit derived from actual block bytes (keep headroom; v7x has 64 MiB).
    csize = jnp.dtype(compute_dtype).itemsize
    osize = jnp.dtype(out_dtype).itemsize
    block_bytes = 2 * NB * TS * (K * csize + C2 * osize)     # double-buffered in/out tiles
    block_bytes += C2 * (K * csize + 3 * 4)                  # resident weight + params
    vmem_limit = int(min(64 * 1024 * 1024, max(24 * 1024 * 1024, 2 * block_bytes)))

    out = pl.pallas_call(
        _stem_kernel,
        out_shape=jax.ShapeDtypeStruct((B, C2, S), out_dtype),
        grid_spec=pltpu.PrefetchScalarGridSpec(
            num_scalar_prefetch=0,
            grid=grid,
            in_specs=[
                # patches: NB images x full K x spatial tile (K on sublanes, TS on lanes)
                pl.BlockSpec((NB, K, TS), lambda b, t: (b, 0, t)),
                # weight / bias / gamma / beta: resident across the whole grid
                pl.BlockSpec((C2, K), lambda b, t: (0, 0)),
                pl.BlockSpec((C2, 1), lambda b, t: (0, 0)),
                pl.BlockSpec((C2, 1), lambda b, t: (0, 0)),
                pl.BlockSpec((C2, 1), lambda b, t: (0, 0)),
            ],
            out_specs=pl.BlockSpec((NB, C2, TS), lambda b, t: (b, 0, t)),
        ),
        compiler_params=pltpu.CompilerParams(
            # Every (b, t) block is independent -> shard across TensorCores on v7x.
            dimension_semantics=("parallel", "parallel"),
            # Let XLA fuse the im2col reshape/transpose/cast into the patches operand.
            allow_input_fusion=[True, False, False, False, False],
            vmem_limit_bytes=vmem_limit,
        ),
    )(patches, w_mat, b_col, g_col, beta_col)

    # (B, C2, S) -> (B, C2, Ho, Wo): pure reshape, no data movement.
    return out.reshape(B, C2, Ho, Wo)


def _reference(x, conv_w, conv_b, ln_w, ln_b, *, k, s):
    """Pure-JAX reference mirroring PyTorch semantics (NCHW conv + channels_first LN)."""
    y = jax.lax.conv_general_dilated(
        x, conv_w, window_strides=(s, s), padding="VALID",
        dimension_numbers=("NCHW", "OIHW", "NCHW"),
    ) + conv_b[None, :, None, None]
    u = jnp.mean(y, axis=1, keepdims=True)
    var = jnp.mean((y - u) ** 2, axis=1, keepdims=True)
    y = (y - u) / jnp.sqrt(var + 1e-6)
    return ln_w[None, :, None, None] * y + ln_b[None, :, None, None]


if __name__ == "__main__":
    key = jax.random.PRNGKey(0)
    kx, kw, kb = jax.random.split(key, 3)

    # Small shapes consistent with a ConvNeXt stem: c1=4, c2=32, k=s=4.
    B, C1, H, W = 2, 4, 16, 16
    C2, K_SZ, STRIDE = 32, 4, 4

    x = jax.random.normal(kx, (B, C1, H, W), dtype=jnp.float32)

    # Deterministic parameter init (shapes per nn.Conv2d / LayerNorm __init__).
    fan_in = C1 * K_SZ * K_SZ
    bound = 1.0 / (fan_in ** 0.5)
    conv_w = jax.random.uniform(kw, (C2, C1, K_SZ, K_SZ), jnp.float32, -bound, bound)
    conv_b = jax.random.uniform(kb, (C2,), jnp.float32, -bound, bound)
    ln_w = jnp.ones((C2,), jnp.float32)
    ln_b = jnp.zeros((C2,), jnp.float32)

    ref = _reference(x, conv_w, conv_b, ln_w, ln_b, k=K_SZ, s=STRIDE)

    # Exact-path check (f32 matmul inputs): tight tolerance vs reference.
    stem_f32 = jax.jit(functools.partial(
        convnext_stem, k=K_SZ, s=STRIDE, compute_dtype=jnp.float32))
    out_f32 = jax.block_until_ready(stem_f32(x, conv_w, conv_b, ln_w, ln_b))
    assert out_f32.shape == (B, C2, H // STRIDE, W // STRIDE)
    assert jnp.allclose(out_f32, ref, atol=1e-4, rtol=1e-4)

    # Default fast path (bf16 matmul inputs, f32 accumulation + LN, f32 output).
    stem = jax.jit(functools.partial(convnext_stem, k=K_SZ, s=STRIDE))
    out = jax.block_until_ready(stem(x, conv_w, conv_b, ln_w, ln_b))
    assert out.shape == (B, C2, H // STRIDE, W // STRIDE)
    assert jnp.allclose(out, ref, atol=3e-2, rtol=3e-2)

    # Low-HBM-traffic path (bf16 output, recommended on v5e/v6e when downstream is bf16).
    stem_bf16 = jax.jit(functools.partial(
        convnext_stem, k=K_SZ, s=STRIDE, out_dtype=jnp.bfloat16))
    out_bf16 = jax.block_until_ready(stem_bf16(x, conv_w, conv_b, ln_w, ln_b))
    assert out_bf16.shape == (B, C2, H // STRIDE, W // STRIDE)
    assert out_bf16.dtype == jnp.bfloat16
    assert bool(jnp.all(jnp.isfinite(out_bf16.astype(jnp.float32))))
    assert jnp.allclose(out_bf16.astype(jnp.float32), ref, atol=1e-1, rtol=1e-1)

    print("KERNEL_OK")
</pallas_src>

<mosaic_0001>
module attributes {stable_mosaic.version = 11 : i64} {
  func.func @_stem_kernel(%arg0: i32, %arg1: i32, %arg2: memref<1x64x16xf32, #tpu.memory_space<vmem>>, %arg3: memref<32x64xf32, #tpu.memory_space<vmem>>, %arg4: memref<32x1xf32, #tpu.memory_space<vmem>>, %arg5: memref<32x1xf32, #tpu.memory_space<vmem>>, %arg6: memref<32x1xf32, #tpu.memory_space<vmem>>, %arg7: memref<1x32x16xf32, #tpu.memory_space<vmem>>) attributes {dimension_semantics = [#tpu.dimension_semantics<parallel>, #tpu.dimension_semantics<parallel>], iteration_bounds = array<i64: 2, 1>, scalar_prefetch = 0 : i64, scratch_operands = 0 : i64, tpu.core_type = #tpu.core_type<tc>, window_params = [{transform_indices = @transform_0, window_bounds = array<i64: 1, 64, 16>}, {pipeline_mode = #tpu.pipeline_mode<synchronous>, transform_indices = @transform_1, window_bounds = array<i64: 32, 64>}, {pipeline_mode = #tpu.pipeline_mode<synchronous>, transform_indices = @transform_2, window_bounds = array<i64: 32, 1>}, {pipeline_mode = #tpu.pipeline_mode<synchronous>, transform_indices = @transform_3, window_bounds = array<i64: 32, 1>}, {pipeline_mode = #tpu.pipeline_mode<synchronous>, transform_indices = @transform_4, window_bounds = array<i64: 32, 1>}, {transform_indices = @transform_5, window_bounds = array<i64: 1, 32, 16>}]} {
    %c0 = arith.constant 0 : index
    %c0_0 = arith.constant 0 : index
    %0 = vector.load %arg3[%c0, %c0_0] : memref<32x64xf32, #tpu.memory_space<vmem>>, vector<32x64xf32>
    %c0_1 = arith.constant 0 : index
    %c0_2 = arith.constant 0 : index
    %1 = vector.load %arg4[%c0_1, %c0_2] : memref<32x1xf32, #tpu.memory_space<vmem>>, vector<32x1xf32>
    %c0_3 = arith.constant 0 : index
    %c0_4 = arith.constant 0 : index
    %2 = vector.load %arg5[%c0_3, %c0_4] : memref<32x1xf32, #tpu.memory_space<vmem>>, vector<32x1xf32>
    %c0_5 = arith.constant 0 : index
    %c0_6 = arith.constant 0 : index
    %3 = vector.load %arg6[%c0_5, %c0_6] : memref<32x1xf32, #tpu.memory_space<vmem>>, vector<32x1xf32>
    %c0_7 = arith.constant 0 : index
    %c0_8 = arith.constant 0 : index
    %c0_9 = arith.constant 0 : index
    %4 = vector.load %arg2[%c0_7, %c0_8, %c0_9] : memref<1x64x16xf32, #tpu.memory_space<vmem>>, vector<1x64x16xf32>
    %5 = vector.shape_cast %4 : vector<1x64x16xf32> to vector<64x16xf32>
    %cst = arith.constant dense<0.000000e+00> : vector<32x16xf32>
    %6 = tpu.matmul %0, %5, %cst {dimension_numbers = #tpu.dot_dimension_numbers<[1], [0], [0], [1], [0, 0, 1, 1], [], []>} : vector<32x64xf32>, vector<64x16xf32>, vector<32x16xf32> -> vector<32x16xf32>
    %7 = vector.broadcast %1 : vector<32x1xf32> to vector<32x16xf32>
    %8 = arith.addf %6, %7 : vector<32x16xf32>
    %cst_10 = arith.constant dense<0.000000e+00> : vector<16xf32>
    %9 = vector.multi_reduction <add>, %8, %cst_10 [0] : vector<32x16xf32> to vector<16xf32>
    %10 = vector.shape_cast %9 : vector<16xf32> to vector<1x16xf32>
    %cst_11 = arith.constant 3.125000e-02 : f32
    %11 = vector.broadcast %cst_11 : f32 to vector<1x16xf32>
    %12 = arith.mulf %10, %11 : vector<1x16xf32>
    %13 = vector.broadcast %12 : vector<1x16xf32> to vector<32x16xf32>
    %14 = arith.subf %8, %13 : vector<32x16xf32>
    %15 = arith.mulf %14, %14 : vector<32x16xf32>
    %cst_12 = arith.constant dense<0.000000e+00> : vector<16xf32>
    %16 = vector.multi_reduction <add>, %15, %cst_12 [0] : vector<32x16xf32> to vector<16xf32>
    %17 = vector.shape_cast %16 : vector<16xf32> to vector<1x16xf32>
    %cst_13 = arith.constant 3.125000e-02 : f32
    %18 = vector.broadcast %cst_13 : f32 to vector<1x16xf32>
    %19 = arith.mulf %17, %18 : vector<1x16xf32>
    %cst_14 = arith.constant 9.99999997E-7 : f32
    %20 = vector.broadcast %cst_14 : f32 to vector<1x16xf32>
    %21 = arith.addf %19, %20 : vector<1x16xf32>
    %22 = math.rsqrt %21 : vector<1x16xf32>
    %23 = vector.broadcast %22 : vector<1x16xf32> to vector<32x16xf32>
    %24 = arith.mulf %14, %23 : vector<32x16xf32>
    %25 = vector.broadcast %2 : vector<32x1xf32> to vector<32x16xf32>
    %26 = arith.mulf %25, %24 : vector<32x16xf32>
    %27 = vector.broadcast %3 : vector<32x1xf32> to vector<32x16xf32>
    %28 = arith.addf %26, %27 : vector<32x16xf32>
    %c0_15 = arith.constant 0 : index
    %c0_16 = arith.constant 0 : index
    %c0_17 = arith.constant 0 : index
    %29 = vector.load %arg7[%c0_15, %c0_16, %c0_17] : memref<1x32x16xf32, #tpu.memory_space<vmem>>, vector<1x32x16xf32>
    %30 = vector.shape_cast %29 : vector<1x32x16xf32> to vector<32x16xf32>
    %31 = vector.shape_cast %28 : vector<32x16xf32> to vector<1x32x16xf32>
    tpu.vector_store %arg7[%c0_15, %c0_16, %c0_17], %31 {strides = array<i32>} : memref<1x32x16xf32, #tpu.memory_space<vmem>>, vector<1x32x16xf32>,
    return
  }
  func.func @transform_0(%arg0: i32, %arg1: i32) -> (i32, i32, i32) {
    %c0_i32 = arith.constant 0 : i32
    %c0_i32_0 = arith.constant 0 : i32
    return %arg0, %c0_i32, %arg1 : i32, i32, i32
  }
  func.func @transform_1(%arg0: i32, %arg1: i32) -> (i32, i32) {
    %c0_i32 = arith.constant 0 : i32
    %c0_i32_0 = arith.constant 0 : i32
    %c0_i32_1 = arith.constant 0 : i32
    return %c0_i32, %c0_i32_0 : i32, i32
  }
  func.func @transform_2(%arg0: i32, %arg1: i32) -> (i32, i32) {
    %c0_i32 = arith.constant 0 : i32
    %c0_i32_0 = arith.constant 0 : i32
    %c0_i32_1 = arith.constant 0 : i32
    return %c0_i32, %c0_i32_0 : i32, i32
  }
  func.func @transform_3(%arg0: i32, %arg1: i32) -> (i32, i32) {
    %c0_i32 = arith.constant 0 : i32
    %c0_i32_0 = arith.constant 0 : i32
    %c0_i32_1 = arith.constant 0 : i32
    return %c0_i32, %c0_i32_0 : i32, i32
  }
  func.func @transform_4(%arg0: i32, %arg1: i32) -> (i32, i32) {
    %c0_i32 = arith.constant 0 : i32
    %c0_i32_0 = arith.constant 0 : i32
    %c0_i32_1 = arith.constant 0 : i32
    return %c0_i32, %c0_i32_0 : i32, i32
  }
  func.func @transform_5(%arg0: i32, %arg1: i32) -> (i32, i32, i32) {
    %c0_i32 = arith.constant 0 : i32
    %c0_i32_0 = arith.constant 0 : i32
    return %arg0, %c0_i32, %arg1 : i32, i32, i32
  }
}

</mosaic_0001>

<bundles_post_ra>
// kernel: convnext_stem.1
= control target key start
LH: loop header
LB: loop body
LE: loop exit
PB: predicated region body
PF: predicated region fallthrough
CT: control target
= control target key end

     0   :  { %s735_s18 = smov 0   ;;  %s737_s19 = smov 0   ;;  %s836_s0 = inlined_call_operand.vmem [shape: f32[2,64,16], index: 0, kind: input, shape index: {}]   ;;  %s837_s1 = inlined_call_operand.vmem [shape: f32[32,64], index: 1, kind: input, shape index: {}]   ;;  %s838_s2 = inlined_call_operand.vmem [shape: f32[32,1], index: 2, kind: input, shape index: {}]   ;;  %s839_s3 = inlined_call_operand.vmem [shape: f32[32,1], index: 3, kind: input, shape index: {}]   ;;  %s840_s4 = inlined_call_operand.vmem [shape: f32[32,1], index: 4, kind: input, shape index: {}]   ;;  %s841_s5 = inlined_call_operand.vmem [shape: f32[2,32,16], index: 5, kind: output, shape index: {}]  }
   0x1   :  { %s739_s20 = smov 0  }
   0x2 LB: > { %s27_s21 = sadd.s32 1, %s698_s19  ;;  %p580_p0 = scmp.ge.s32.totalorder %s702_s20, 1  ;;  %s702_s20 = sphi %s739_s20, %s15_s20   ;;  %s698_s19 = sphi %s737_s19, %s843_s19   ;;  %s694_s18 = sphi %s735_s18, %s842_s18  }
   0x3   : > { %p29_p1 = scmp.ge.s32.totalorder %s27_s21, 2  ;;  %p206_p2 = scmp.lt.s32.totalorder %s702_s20, 3 }
   0x5   : > { %s845_s21 = smov (%p29_p1, %s27_s21), 0  ;;  %p207_p3 = pnand %p580_p0, %p206_p2 }
   0x6   : > { %p240_p4 = scmp.lt.s32.totalorder (!%p207_p3), %s694_s18, 1  ;;  %v256_v0 = vld [vmem:[%s837_s1] sm:$0xff] (!%p207_p3)  ;;  %vm300_vm0 = vcmask (!%p207_p3), 523264   ;;  %v258_v1 = vld [vmem:[%s837_s1 + $0x10] sm:$0xff] (!%p207_p3)  ;;  %v704_v4 = vmov (!%p207_p3), 0   ;;  %v261_v5 = vld [vmem:[%s838_s2 + $0x8] sm:$0xff] (!%p207_p3) }
   0x7   : > { %210 = sbr.rel (%p207_p3) target bundleno = 318 (0x13e), region = 40  ;;  %621 = vmatprep.mubr.msk.f32.mxu0 (!%p207_p3), %vm300_vm0, %v256_v0  ;;  %624 = vmatprep.mubr.msk.f32.mxu1 (!%p207_p3), %vm300_vm0, %v258_v1  ;;  %v260_v2 = vld [vmem:[%s838_s2] sm:$0xff] (!%p207_p3)  ;;  %v262_v3 = vld [vmem:[%s838_s2 + $0x10] sm:$0xff] (!%p207_p3)  ;;  %v263_v6 = vld [vmem:[%s838_s2 + $0x18] sm:$0xff] (!%p207_p3)  ;;  %vm398_vm1 = vcmask (!%p207_p3), 130048  }
   0x8   : > { %676 = vset.pattern.permute.xlu0 (!%p207_p3), %v704_v4  ;;  %677 = vset.pattern.permute.xlu1 (!%p207_p3), %v704_v4  ;;  %v264_v15 = vld [vmem:[%s839_s3] sm:$0xff] (!%p207_p3)  ;;  %v265_v16 = vld [vmem:[%s839_s3 + $0x8] sm:$0xff] (!%p207_p3)  ;;  %v266_v20 = vld [vmem:[%s839_s3 + $0x10] sm:$0xff] (!%p207_p3) }
   0x9   : > { %282 = vperm.xlu0 (!%p207_p3), %676, %v260_v2   ;;  %292 = vperm.xlu1 (!%p207_p3), %677, %v262_v3   ;;  %v267_v21 = vld [vmem:[%s839_s3 + $0x18] sm:$0xff] (!%p207_p3)  ;;  %v268_v23 = vld [vmem:[%s840_s4] sm:$0xff] (!%p207_p3)  ;;  %v269_v24 = vld [vmem:[%s840_s4 + $0x8] sm:$0xff] (!%p207_p3) }
   0xa   : > { %v270_v25 = vld [vmem:[%s840_s4 + $0x10] sm:$0xff] (!%p207_p3)  ;;  %v271_v26 = vld [vmem:[%s840_s4 + $0x18] sm:$0xff] (!%p207_p3)  ;;  %v257_v27 = vld [vmem:[%s837_s1 + $0x8] sm:$0xff] (!%p207_p3) }
   0xb   : > { %v259_v28 = vld [vmem:[%s837_s1 + $0x18] sm:$0xff] (!%p207_p3) }
   0xd   : > { %287 = vperm.xlu0 (!%p207_p3), %676, %v261_v5   ;;  %297 = vperm.xlu1 (!%p207_p3), %677, %v263_v6  }
   0xe   : > { %s847_s18 = smov (!%p240_p4, %s694_s18), 1 }
   0xf   : > { %s591_s30 = sshll.u32 %s847_s18, 6 }
  0x10   : > { %s247_s12 = scalar_lea.vmem %s836_s0, %s591_s30 }
  0x11   : > { %v272_v7 = vld [vmem:[%s247_s12] sm:$0xff]  ;;  %v273_v8 = vld [vmem:[%s247_s12 + $0x8] sm:$0xff]  ;;  %v274_v9 = vld [vmem:[%s247_s12 + $0x10] sm:$0xff]  ;;  %443 = vperm.xlu0 %676, %v264_v15   ;;  %448 = vperm.xlu1 %677, %v265_v16  }
  0x12   : > { %v627_v10 = vpack.c.bf16 %v273_v8, %v272_v7  ;;  %v275_v11 = vld [vmem:[%s247_s12 + $0x18] sm:$0xff]  ;;  %v276_v13 = vld [vmem:[%s247_s12 + $0x20] sm:$0xff]  ;;  %v277_v14 = vld [vmem:[%s247_s12 + $0x28] sm:$0xff] }
  0x13   : > { %v631_v12 = vpack.c.bf16 %v275_v11, %v274_v9  ;;  %v635_v17 = vpack.c.bf16 %v277_v14, %v276_v13  ;;  %v278_v18 = vld [vmem:[%s247_s12 + $0x30] sm:$0xff]  ;;  %v279_v19 = vld [vmem:[%s247_s12 + $0x38] sm:$0xff]  ;;  %s592_s12 = sshll.u32 %s847_s18, 5 }
  0x14   : > { %628 = vmatprep.subr.bf16.mxu0 %v627_v10  ;;  %643 = vmatprep.subr.bf16.mxu1 %v627_v10  ;;  %v639_v22 = vpack.c.bf16 %v279_v19, %v278_v18  ;;  %s255_s15 = scalar_lea.vmem %s841_s5, %s592_s12 }
  0x15   : > { %630 = vmatpush3.bf16.msra.mxu0 %v627_v10  ;;  %647 = vmatpush3.bf16.msra.mxu1 %v627_v10 }
  0x16   : > { %632 = vmatprep.subr.bf16.mxu0 %v631_v12  ;;  %644 = vmatprep.subr.bf16.mxu1 %v631_v12 }
  0x17   : > { %453 = vperm.xlu0 %676, %v266_v20   ;;  %458 = vperm.xlu1 %677, %v267_v21  }
  0x19   : > { %634 = vmatpush3.bf16.msra.mxu0 %v631_v12  ;;  %648 = vmatpush3.bf16.msra.mxu1 %v631_v12 }
  0x1a   : > { %636 = vmatprep.subr.bf16.mxu0 %v635_v17  ;;  %645 = vmatprep.subr.bf16.mxu1 %v635_v17 }
  0x1b   : > { %467 = vperm.xlu0 %676, %v268_v23   ;;  %472 = vperm.xlu1 %677, %v269_v24  }
  0x1d   : > { %638 = vmatpush3.bf16.msra.mxu0 %v635_v17  ;;  %649 = vmatpush3.bf16.msra.mxu1 %v635_v17 }
  0x1e   : > { %640 = vmatprep.subr.bf16.mxu0 %v639_v22  ;;  %646 = vmatprep.subr.bf16.mxu1 %v639_v22 }
  0x1f   : > { %477 = vperm.xlu0 %676, %v270_v25   ;;  %482 = vperm.xlu1 %677, %v271_v26  }
  0x21   : > { %642 = vmatpush3.bf16.msra.mxu0 %v639_v22  ;;  %650 = vmatpush3.bf16.msra.mxu1 %v639_v22 }
  0x24   : > { %622 = vmatmul.mubr.msk.f32.vlgmr.msra.gmra.mrb[0].mxu0 %vm300_vm0, %v257_v27  ;;  %625 = vmatmul.mubr.msk.f32.vlgmr.msra.gmra.mrb[0].mxu1 %vm300_vm0, %v259_v28 }
  0x88   : > { %v283_v29 = vpop.permute.xlu0 %282  ;;  %v293_v30 = vpop.permute.xlu1 %292 }
  0x8c   : > { %v288_v31 = vpop.permute.xlu0 %287  ;;  %v298_v39 = vpop.permute.xlu1 %297 }
  0x90   : > { %v444_v12 = vpop.permute.xlu0 %443  ;;  %v449_v13 = vpop.permute.xlu1 %448 }
  0x96   : > { %v454_v16 = vpop.permute.xlu0 %453  ;;  %v459_v17 = vpop.permute.xlu1 %458 }
  0x9a   : > { %v468_v18 = vpop.permute.xlu0 %467  ;;  %v473_v19 = vpop.permute.xlu1 %472 }
  0xf7   : > { %v623_v32 = vpop.f32.mrb[0].mxu0  ;;  %v626_v33 = vpop.f32.mrb[0].mxu1 }
  0xf8   : > { %v385_v34 = vadd.f32 %v623_v32, %v288_v31  ;;  %v379_v35 = vpop.f32.mrb[1].mxu0  ;;  %v389_v36 = vpop.f32.mrb[1].mxu1  ;;  %v395_v41 = vadd.f32 %v626_v33, %v298_v39 }
  0xf9   : > { %v380_v37 = vadd.f32 %v379_v35, %v283_v29  ;;  %v390_v38 = vadd.f32 %v389_v36, %v293_v30  ;;  %v478_v29 = vpop.permute.xlu0 %477  ;;  %v483_v30 = vpop.permute.xlu1 %482 }
  0xfa   : > { %v400_v40 = vsel %vm398_vm1, %v385_v34, 0.0  ;;  %v404_v46 = vsel %vm398_vm1, %v395_v41, 0.0 }
  0xfb   : > { %v399_v42 = vsel %vm398_vm1, %v380_v37, 0.0  ;;  %v402_v44 = vsel %vm398_vm1, %v390_v38, 0.0 }
  0xfc   : > { %v401_v43 = vadd.f32 %v400_v40, %v399_v42 }
  0xfe   : > { %v403_v45 = vadd.f32 %v402_v44, %v401_v43 }
 0x100   : > { %v405_v47 = vadd.f32 %v404_v46, %v403_v45 }
 0x102   : > { %v406_v48 = vrot.slane %v405_v47, 4 }
 0x104   : > { %v407_v49 = vadd.f32 %v406_v48, %v405_v47 }
 0x106   : > { %v408_v50 = vrot.slane %v407_v49, 2 }
 0x108   : > { %v409_v51 = vadd.f32 %v408_v50, %v407_v49 }
 0x10a   : > { %v410_v52 = vrot.slane %v409_v51, 1 }
 0x10c   : > { %v411_v53 = vadd.f32 %v410_v52, %v409_v51 }
 0x10e   : > { %v412_v54 = vmul.f32 0.03125, %v411_v53 }
 0x110   : > { %v413_v55 = vsub.f32 %v380_v37, %v412_v54  ;;  %v414_v56 = vsub.f32 %v385_v34, %v412_v54  ;;  %v415_v57 = vsub.f32 %v390_v38, %v412_v54  ;;  %v416_v58 = vsub.f32 %v395_v41, %v412_v54 }
 0x112   : > { %v417_v59 = vmul.f32 %v413_v55, %v413_v55  ;;  %v418_v60 = vmul.f32 %v414_v56, %v414_v56  ;;  %v419_v61 = vmul.f32 %v415_v57, %v415_v57  ;;  %v420_v62 = vmul.f32 %v416_v58, %v416_v58 }
 0x114   : > { %v421_v63 = vsel %vm398_vm1, %v417_v59, 0.0  ;;  %v422_v0 = vsel %vm398_vm1, %v418_v60, 0.0  ;;  %v424_v2 = vsel %vm398_vm1, %v419_v61, 0.0  ;;  %v426_v4 = vsel %vm398_vm1, %v420_v62, 0.0 }
 0x115   : > { %v423_v1 = vadd.f32 %v422_v0, %v421_v63 }
 0x117   : > { %v425_v3 = vadd.f32 %v424_v2, %v423_v1 }
 0x119   : > { %v427_v5 = vadd.f32 %v426_v4, %v425_v3 }
 0x11b   : > { %v428_v6 = vrot.slane %v427_v5, 4 }
 0x11d   : > { %v429_v7 = vadd.f32 %v428_v6, %v427_v5 }
 0x11f   : > { %v430_v8 = vrot.slane %v429_v7, 2 }
 0x121   : > { %v431_v9 = vadd.f32 %v430_v8, %v429_v7 }
 0x123   : > { %v432_v10 = vrot.slane %v431_v9, 1 }
 0x125   : > { %v433_v11 = vadd.f32 %v432_v10, %v431_v9 }
 0x127   : > { %v434_v14 = vmul.f32 0.03125, %v433_v11 }
 0x129   : > { %v435_v15 = vadd.f32 1e-06, %v434_v14 }
 0x12b   : > { %678 = vrsqrt.f32 %v435_v15 }
 0x135   : > { %v679_v20 = vpop.eup %678 }
 0x136   : > { %v437_v21 = vmul.f32 %v679_v20, %v413_v55  ;;  %v438_v22 = vmul.f32 %v679_v20, %v414_v56  ;;  %v439_v23 = vmul.f32 %v679_v20, %v415_v57  ;;  %v440_v24 = vmul.f32 %v679_v20, %v416_v58 }
 0x138   : > { %v461_v25 = vmul.f32 %v444_v12, %v437_v21  ;;  %v462_v26 = vmul.f32 %v449_v13, %v438_v22  ;;  %v463_v27 = vmul.f32 %v454_v16, %v439_v23  ;;  %v464_v28 = vmul.f32 %v459_v17, %v440_v24 }
 0x13a   : > { %v485_v31 = vadd.f32 %v468_v18, %v461_v25  ;;  %v486_v32 = vadd.f32 %v473_v19, %v462_v26  ;;  %v487_v33 = vadd.f32 %v478_v29, %v463_v27  ;;  %v488_v34 = vadd.f32 %v483_v30, %v464_v28 }
 0x13c   : > { %489 = vst.msk [vmem:[%s255_s15] sm:$0xff] %vm398_vm1, %v485_v31  ;;  %490 = vst.msk [vmem:[%s255_s15 + $0x8] sm:$0xff] %vm398_vm1, %v486_v32 }
 0x13d   : > { %491 = vst.msk [vmem:[%s255_s15 + $0x10] sm:$0xff] %vm398_vm1, %v487_v33  ;;  %492 = vst.msk [vmem:[%s255_s15 + $0x18] sm:$0xff] %vm398_vm1, %v488_v34 }
 0x13e PF: > { %s15_s20 = sadd.s32 1, %s702_s20   ;;  %s842_s18 = smov %s698_s19 }
 0x13f   : > { %p12_p5 = scmp.ge.s32.totalorder %s15_s20, 4   ;;  %s843_s19 = smov %s845_s21 }
 0x141   :  { %14 = sbr.rel (!%p12_p5) target bundleno = 2 (0x2), region = 70 }

</bundles_post_ra>
